<compile_context>
chip_gen: v7x
topology: tpu7x:2x2x1
jax: 0.10.0
libtpu: 0.0.40
codegen_flags: <defaults>
</compile_context>

<pallas_src>
import jax
import jax.numpy as jnp
from jax.experimental import pallas as pl
from jax.experimental.pallas import tpu as pltpu


# ----------------------------------------------------------------------------------
# Hardware queries (generation-aware, defensive)
# ----------------------------------------------------------------------------------

def _device_kind():
    try:
        return jax.devices()[0].device_kind.lower()
    except Exception:
        return ""


def _vmem_capacity_bytes():
    """Physical VMEM per TensorCore; conservative fallback = 64 MiB (v7x per-TC)."""
    cap = None
    try:
        cap = int(pltpu.get_tpu_info().vmem_capacity_bytes)
    except Exception:
        cap = None
    kind = _device_kind()
    if "v7" in kind:
        # TODO(synk): confirm get_tpu_info() reports per-TensorCore (64 MiB) VMEM on
        # v7x rather than a per-chip aggregate; clamp so the budget can't be 2x too big.
        cap = min(cap or (64 << 20), 64 << 20)
    if cap is None:
        cap = 64 << 20
    return int(min(cap, 128 << 20))


def _needs_f32_upcast(dtype):
    """Upcast narrow logits to f32 only where the VPU can't handle them natively.

    bf16 max/compare is exact (the row max is an element of the row), so on v6e/v7x
    (native bf16 VPU) bf16 stays bf16 end-to-end.  v5e (no bf16 VPU) and any other
    sub-32-bit dtype get the exact f32 upcast.
    """
    dt = jnp.dtype(dtype)
    if dt.itemsize >= 4:
        return False
    if dt == jnp.dtype(jnp.bfloat16):
        kind = _device_kind()
        if any(tag in kind for tag in ("v6", "v7", "trillium")):
            return False
    return True


# ----------------------------------------------------------------------------------
# Kernel
# ----------------------------------------------------------------------------------

def _make_kernel(upcast):
    """Build the kernel for G groups; upcast[g] says whether group g needs f32."""

    def kernel(tgt_ref, *refs):
        x_refs = refs[:-1]
        out_ref = refs[-1]
        tgt = tgt_ref[...]                                # [tb, G] i32
        acc = jnp.zeros(out_ref.shape, jnp.int32)         # [tb, 1]
        iotas = {}                                        # one iota per distinct C
        for g, x_ref in enumerate(x_refs):
            x = x_ref[...]                                # [tb, Cg], native dtype DMA
            if upcast[g]:
                x = x.astype(jnp.float32)                 # exact for bf16; v5e path
            C = x.shape[-1]
            if C not in iotas:                            # JAX does not CSE iota
                iotas[C] = jax.lax.broadcasted_iota(jnp.int32, x.shape, 1)
            lane_idx = iotas[C]
            # First-occurrence argmax over the class (lane) dim == torch.topk(1).indices.
            # NOTE: NaN logits make the row always count as a mismatch (torch.topk would
            # return the NaN index) -- degenerate inputs only.
            max_val = jnp.max(x, axis=-1, keepdims=True)                    # [tb, 1]
            pred = jnp.min(
                jnp.where(x == max_val, lane_idx, jnp.int32(C)),
                axis=-1, keepdims=True)                                     # [tb, 1] i32
            acc = acc + jnp.where(pred == tgt[:, g:g + 1], 0, 1).astype(jnp.int32)
        out_ref[...] = acc
        # TODO(synk): if v7x profiling shows the two cross-lane reductions per group as
        # the binding XLU slot, fuse them into one jnp.max by packing an order-preserving
        # int16 view of the logit with the bit-inverted lane index into a single int32.

    return kernel


# ----------------------------------------------------------------------------------
# Tile / grid shaping
# ----------------------------------------------------------------------------------

_MIN_GRID_STEPS = 8     # enough steps for double-buffered DMA/compute overlap


def _round_up(x, m):
    return ((x + m - 1) // m) * m


def _pick_tile(B, G, xs, upcast, max_rows_per_block=None):
    """Choose (tb, grid_b): a VMEM-budgeted, packing-aligned batch tile and its grid."""
    # Sublane packing: f32 rows align to 8, bf16 to 16, 1-byte dtypes to 32.
    row_align = 8
    for x in xs:
        row_align = max(row_align, 8 * (4 // max(jnp.dtype(x.dtype).itemsize, 1)))

    vmem_cap = _vmem_capacity_bytes()
    budget = vmem_cap // 2                       # headroom for compiler scratch/spills

    # Resident bytes per batch row.
    dbuf = 2                                     # BlockSpec double-buffering
    per_row = dbuf * (G * 4 + 4)                 # i32 target row + i32 output row
    work = 0
    iota_Cs = set()
    for x, up in zip(xs, upcast):
        C = x.shape[-1]
        itemsize = jnp.dtype(x.dtype).itemsize
        per_row += dbuf * C * itemsize           # DMA landing buffer (native dtype)
        iota_Cs.add(C)
        w = C * (4 if up else itemsize)          # x as consumed by the VPU (f32 temp!)
        w += 4 * C                               # masked lane-index temp (int32)
        work = max(work, w)
    per_row += work + sum(4 * C for C in iota_Cs)    # per-group temps + cached iotas

    tb = budget // max(per_row, 1)
    if max_rows_per_block is not None:
        tb = min(tb, max(int(max_rows_per_block), row_align))

    # Grid shaping: keep >= _MIN_GRID_STEPS steps so the DMA is hidden behind compute
    # and the "parallel" batch axis can be megacore-sharded; collapse only for tiny B.
    if B >= _MIN_GRID_STEPS * row_align:
        tb = min(tb, _round_up(pl.cdiv(B, _MIN_GRID_STEPS), row_align))
    elif B > 2 * row_align:
        tb = min(tb, _round_up(pl.cdiv(B, 2), row_align))

    tb = max(row_align, (tb // row_align) * row_align)
    if tb >= B:
        return B, 1
    grid_b = pl.cdiv(B, tb)

    # Best-effort: even step count (v7x has 2 TensorCores on the parallel axis), but
    # never pay more than a couple of extra grid steps for parity.
    if grid_b % 2 == 1 and tb > row_align:
        for tb_alt in range(tb - row_align, row_align - 1, -row_align):
            g_alt = pl.cdiv(B, tb_alt)
            if g_alt % 2 == 0:
                tb, grid_b = tb_alt, g_alt
                break
            if g_alt > grid_b + 2:
                break
    return tb, grid_b


# ----------------------------------------------------------------------------------
# pallas_call wrapper
# ----------------------------------------------------------------------------------

def _multi_top1_loss_vec(xs, target, *, max_rows_per_block=None):
    """xs: list of G arrays [B, C_g] (native dtype); target: [B, G] i32 -> [B, 1] i32."""
    G = len(xs)
    B = target.shape[0]
    upcast = tuple(_needs_f32_upcast(x.dtype) for x in xs)
    tb, grid_b = _pick_tile(B, G, xs, upcast, max_rows_per_block)

    vmem_cap = _vmem_capacity_bytes()
    vmem_limit = int(min(vmem_cap * 3 // 4, 112 * 1024 * 1024))

    in_specs = [pl.BlockSpec((tb, G), lambda i: (i, 0))]              # target
    for x in xs:
        # TODO(synk): sweep pipeline_mode=pl.Buffered(3) here if the G+2 small DMAs per
        # grid step still leave DMA latency exposed after the tile enlargement.
        in_specs.append(pl.BlockSpec((tb, x.shape[-1]), lambda i: (i, 0)))

    total_logit_bytes = sum(B * x.shape[-1] * jnp.dtype(x.dtype).itemsize for x in xs)
    cost = pl.CostEstimate(
        flops=int(3 * sum(B * x.shape[-1] for x in xs)),
        transcendentals=0,
        bytes_accessed=int(total_logit_bytes + B * G * 4 + B * 4))

    return pl.pallas_call(
        _make_kernel(upcast),
        out_shape=jax.ShapeDtypeStruct((B, 1), jnp.int32),
        grid=(grid_b,),
        in_specs=in_specs,
        out_specs=pl.BlockSpec((tb, 1), lambda i: (i, 0)),
        compiler_params=pltpu.CompilerParams(
            dimension_semantics=("parallel",),
            vmem_limit_bytes=vmem_limit),
        cost_estimate=cost,
    )(target, *xs)


def multi_top1_loss(inputs, target, reduction="mean", *, max_rows_per_block=None):
    """inputs: sequence of G arrays [..., C_g] (any float dtype); target: [..., G] int."""
    xs = [jnp.asarray(g) for g in inputs]             # native dtype: no f32 upcast in HBM
    target = jnp.asarray(target, jnp.int32)
    lead = target.shape[:-1]
    G = target.shape[-1]
    assert len(xs) == G, "number of input groups must match target's last dim"
    B = 1
    for d in lead:
        B *= d
    xs2 = [x.reshape(B, x.shape[-1]) for x in xs]
    tgt2 = target.reshape(B, G)

    loss_vec = _multi_top1_loss_vec(xs2, tgt2, max_rows_per_block=max_rows_per_block)
    loss_vec = loss_vec.reshape(lead + (1,))          # [..., 1] int32

    if reduction == "none":
        return loss_vec
    elif reduction == "mean":
        # TODO(synk): torch.mean() on an int32 tensor actually raises in PyTorch; we
        # implement the intended semantics (float mean of the per-sample counts).
        return jnp.mean(loss_vec.astype(jnp.float32))
    elif reduction == "sum":
        return jnp.sum(loss_vec)
    else:
        raise ValueError(f"{reduction} is not a valid value for reduction")


# ----------------------------------------------------------------------------------
# Pure-JAX reference + tests
# ----------------------------------------------------------------------------------

def _reference(inputs, target, reduction="mean"):
    """Pure-JAX reference mirroring the PyTorch forward."""
    target = jnp.asarray(target, jnp.int32)
    losses = []
    for g, gi in enumerate(inputs):
        pred = jnp.argmax(jnp.asarray(gi), axis=-1, keepdims=True).astype(jnp.int32)
        losses.append(1 - (pred == target[..., g, None]).astype(jnp.int32))
    loss_vec = sum(losses)
    if reduction == "none":
        return loss_vec
    elif reduction == "mean":
        return jnp.mean(loss_vec.astype(jnp.float32))
    elif reduction == "sum":
        return jnp.sum(loss_vec)


if __name__ == "__main__":
    key = jax.random.PRNGKey(0)

    # --- case 1: f32 logits, per-group class counts, all reductions (tiny B, grid=1) --
    B, G = 8, 3
    Cs = (32, 64, 16)
    keys = jax.random.split(key, G + 1)
    inputs = [jax.random.normal(keys[g], (B, Cs[g]), dtype=jnp.float32) for g in range(G)]
    target = jnp.stack(
        [jax.random.randint(jax.random.fold_in(keys[G], g), (B,), 0, Cs[g], dtype=jnp.int32)
         for g in range(G)], axis=-1)
    # Force a few correct predictions so both match / mismatch branches are exercised.
    forced = jnp.array([int(jnp.argmax(inputs[g][0])) for g in range(G)], dtype=jnp.int32)
    target = target.at[0].set(forced)

    loss_none = jax.block_until_ready(multi_top1_loss(inputs, target, "none"))
    ref_none = _reference(inputs, target, "none")
    assert loss_none.shape == (B, 1) and loss_none.dtype == jnp.int32
    assert bool(jnp.all(loss_none == ref_none))

    loss_mean = jax.block_until_ready(multi_top1_loss(inputs, target, "mean"))
    assert abs(float(loss_mean) - float(_reference(inputs, target, "mean"))) < 1e-6

    loss_sum = jax.block_until_ready(multi_top1_loss(inputs, target, "sum"))
    assert int(loss_sum) == int(_reference(inputs, target, "sum"))

    # --- case 2: bf16 logits (native-dtype DMA, generation-gated upcast), multi-block
    #             grid with a partial tail block ---------------------------------------
    B2, G2, C2 = 20, 2, 128
    k2 = jax.random.split(jax.random.PRNGKey(1), G2 + 1)
    inputs2 = [jax.random.normal(k2[g], (B2, C2)).astype(jnp.bfloat16) for g in range(G2)]
    target2 = jax.random.randint(k2[G2], (B2, G2), 0, C2, dtype=jnp.int32)
    loss2 = jax.block_until_ready(
        multi_top1_loss(inputs2, target2, "none", max_rows_per_block=16))  # grid=2, tail
    assert bool(jnp.all(loss2 == _reference(inputs2, target2, "none")))

    # --- case 3: extra leading dims (flattened internally) -----------------------------
    lead, G3, C3 = (2, 5), 2, 32
    k3 = jax.random.split(jax.random.PRNGKey(2), G3 + 1)
    inputs3 = [jax.random.normal(k3[g], lead + (C3,), dtype=jnp.float32) for g in range(G3)]
    target3 = jax.random.randint(k3[G3], lead + (G3,), 0, C3, dtype=jnp.int32)
    loss3 = jax.block_until_ready(multi_top1_loss(inputs3, target3, "none"))
    assert loss3.shape == lead + (1,)
    assert bool(jnp.all(loss3 == _reference(inputs3, target3, "none")))

    # --- case 4: larger batch -> multi-step pipelined grid (>= 8 steps, even) ----------
    B4, G4, C4 = 256, 2, 64
    k4 = jax.random.split(jax.random.PRNGKey(3), G4 + 1)
    inputs4 = [jax.random.normal(k4[g], (B4, C4), dtype=jnp.float32) for g in range(G4)]
    target4 = jax.random.randint(k4[G4], (B4, G4), 0, C4, dtype=jnp.int32)
    tb4, grid4 = _pick_tile(B4, G4, inputs4,
                            tuple(_needs_f32_upcast(x.dtype) for x in inputs4))
    assert grid4 >= 4, f"grid shaping failed: grid_b={grid4}"
    loss4 = jax.block_until_ready(multi_top1_loss(inputs4, target4, "none"))
    assert bool(jnp.all(loss4 == _reference(inputs4, target4, "none")))

    print("KERNEL_OK")
</pallas_src>

<mosaic_0001>
module attributes {stable_mosaic.version = 11 : i64} {
  func.func @kernel(%arg0: i32, %arg1: memref<8x3xi32, #tpu.memory_space<vmem>>, %arg2: memref<8x32xf32, #tpu.memory_space<vmem>>, %arg3: memref<8x64xf32, #tpu.memory_space<vmem>>, %arg4: memref<8x16xf32, #tpu.memory_space<vmem>>, %arg5: memref<8x1xi32, #tpu.memory_space<vmem>>) attributes {dimension_semantics = [#tpu.dimension_semantics<parallel>], iteration_bounds = array<i64: 1>, scalar_prefetch = 0 : i64, scratch_operands = 0 : i64, tpu.core_type = #tpu.core_type<tc>, window_params = [{transform_indices = @transform_0, window_bounds = array<i64: 8, 3>}, {transform_indices = @transform_1, window_bounds = array<i64: 8, 32>}, {transform_indices = @transform_2, window_bounds = array<i64: 8, 64>}, {transform_indices = @transform_3, window_bounds = array<i64: 8, 16>}, {transform_indices = @transform_4, window_bounds = array<i64: 8, 1>}]} {
    %c0 = arith.constant 0 : index
    %c0_0 = arith.constant 0 : index
    %0 = vector.load %arg1[%c0, %c0_0] : memref<8x3xi32, #tpu.memory_space<vmem>>, vector<8x3xi32>
    %c0_i32 = arith.constant 0 : i32
    %1 = vector.broadcast %c0_i32 : i32 to vector<8x1xi32>
    %c0_1 = arith.constant 0 : index
    %c0_2 = arith.constant 0 : index
    %2 = vector.load %arg2[%c0_1, %c0_2] : memref<8x32xf32, #tpu.memory_space<vmem>>, vector<8x32xf32>
    %3 = tpu.iota {dimensions = array<i32: 1>} : vector<8x32xi32>
    %cst = arith.constant dense<0xFF800000> : vector<8xf32>
    %4 = vector.multi_reduction <maximumf>, %2, %cst [1] : vector<8x32xf32> to vector<8xf32>
    %5 = vector.shape_cast %4 : vector<8xf32> to vector<8x1xf32>
    %6 = vector.broadcast %5 : vector<8x1xf32> to vector<8x32xf32>
    %7 = arith.cmpf oeq, %2, %6 : vector<8x32xf32>
    %c32_i32 = arith.constant 32 : i32
    %8 = vector.broadcast %c32_i32 : i32 to vector<8x32xi32>
    %9 = arith.select %7, %3, %8 : vector<8x32xi1>, vector<8x32xi32>
    %cst_3 = arith.constant dense<2147483647> : vector<8xi32>
    %10 = vector.multi_reduction <minsi>, %9, %cst_3 [1] : vector<8x32xi32> to vector<8xi32>
    %11 = vector.shape_cast %10 : vector<8xi32> to vector<8x1xi32>
    %12 = vector.extract_strided_slice %0 {offsets = [0, 0], sizes = [8, 1], strides = [1, 1]} : vector<8x3xi32> to vector<8x1xi32>
    %13 = arith.cmpi eq, %11, %12 : vector<8x1xi32>
    %c0_i32_4 = arith.constant 0 : i32
    %c1_i32 = arith.constant 1 : i32
    %14 = vector.broadcast %c0_i32_4 : i32 to vector<8x1xi32>
    %15 = vector.broadcast %c1_i32 : i32 to vector<8x1xi32>
    %16 = arith.select %13, %14, %15 : vector<8x1xi1>, vector<8x1xi32>
    %17 = arith.addi %1, %16 : vector<8x1xi32>
    %c0_5 = arith.constant 0 : index
    %c0_6 = arith.constant 0 : index
    %18 = vector.load %arg3[%c0_5, %c0_6] : memref<8x64xf32, #tpu.memory_space<vmem>>, vector<8x64xf32>
    %19 = tpu.iota {dimensions = array<i32: 1>} : vector<8x64xi32>
    %cst_7 = arith.constant dense<0xFF800000> : vector<8xf32>
    %20 = vector.multi_reduction <maximumf>, %18, %cst_7 [1] : vector<8x64xf32> to vector<8xf32>
    %21 = vector.shape_cast %20 : vector<8xf32> to vector<8x1xf32>
    %22 = vector.broadcast %21 : vector<8x1xf32> to vector<8x64xf32>
    %23 = arith.cmpf oeq, %18, %22 : vector<8x64xf32>
    %c64_i32 = arith.constant 64 : i32
    %24 = vector.broadcast %c64_i32 : i32 to vector<8x64xi32>
    %25 = arith.select %23, %19, %24 : vector<8x64xi1>, vector<8x64xi32>
    %cst_8 = arith.constant dense<2147483647> : vector<8xi32>
    %26 = vector.multi_reduction <minsi>, %25, %cst_8 [1] : vector<8x64xi32> to vector<8xi32>
    %27 = vector.shape_cast %26 : vector<8xi32> to vector<8x1xi32>
    %28 = vector.extract_strided_slice %0 {offsets = [0, 1], sizes = [8, 1], strides = [1, 1]} : vector<8x3xi32> to vector<8x1xi32>
    %29 = arith.cmpi eq, %27, %28 : vector<8x1xi32>
    %c0_i32_9 = arith.constant 0 : i32
    %c1_i32_10 = arith.constant 1 : i32
    %30 = vector.broadcast %c0_i32_9 : i32 to vector<8x1xi32>
    %31 = vector.broadcast %c1_i32_10 : i32 to vector<8x1xi32>
    %32 = arith.select %29, %30, %31 : vector<8x1xi1>, vector<8x1xi32>
    %33 = arith.addi %17, %32 : vector<8x1xi32>
    %c0_11 = arith.constant 0 : index
    %c0_12 = arith.constant 0 : index
    %34 = vector.load %arg4[%c0_11, %c0_12] : memref<8x16xf32, #tpu.memory_space<vmem>>, vector<8x16xf32>
    %35 = tpu.iota {dimensions = array<i32: 1>} : vector<8x16xi32>
    %cst_13 = arith.constant dense<0xFF800000> : vector<8xf32>
    %36 = vector.multi_reduction <maximumf>, %34, %cst_13 [1] : vector<8x16xf32> to vector<8xf32>
    %37 = vector.shape_cast %36 : vector<8xf32> to vector<8x1xf32>
    %38 = vector.broadcast %37 : vector<8x1xf32> to vector<8x16xf32>
    %39 = arith.cmpf oeq, %34, %38 : vector<8x16xf32>
    %c16_i32 = arith.constant 16 : i32
    %40 = vector.broadcast %c16_i32 : i32 to vector<8x16xi32>
    %41 = arith.select %39, %35, %40 : vector<8x16xi1>, vector<8x16xi32>
    %cst_14 = arith.constant dense<2147483647> : vector<8xi32>
    %42 = vector.multi_reduction <minsi>, %41, %cst_14 [1] : vector<8x16xi32> to vector<8xi32>
    %43 = vector.shape_cast %42 : vector<8xi32> to vector<8x1xi32>
    %44 = vector.extract_strided_slice %0 {offsets = [0, 2], sizes = [8, 1], strides = [1, 1]} : vector<8x3xi32> to vector<8x1xi32>
    %45 = arith.cmpi eq, %43, %44 : vector<8x1xi32>
    %c0_i32_15 = arith.constant 0 : i32
    %c1_i32_16 = arith.constant 1 : i32
    %46 = vector.broadcast %c0_i32_15 : i32 to vector<8x1xi32>
    %47 = vector.broadcast %c1_i32_16 : i32 to vector<8x1xi32>
    %48 = arith.select %45, %46, %47 : vector<8x1xi1>, vector<8x1xi32>
    %49 = arith.addi %33, %48 : vector<8x1xi32>
    %c0_17 = arith.constant 0 : index
    %c0_18 = arith.constant 0 : index
    %50 = vector.load %arg5[%c0_17, %c0_18] : memref<8x1xi32, #tpu.memory_space<vmem>>, vector<8x1xi32>
    tpu.vector_store %arg5[%c0_17, %c0_18], %49 {strides = array<i32>} : memref<8x1xi32, #tpu.memory_space<vmem>>, vector<8x1xi32>,
    return
  }
  func.func @transform_0(%arg0: i32) -> (i32, i32) {
    %c0_i32 = arith.constant 0 : i32
    %c0_i32_0 = arith.constant 0 : i32
    return %arg0, %c0_i32 : i32, i32
  }
  func.func @transform_1(%arg0: i32) -> (i32, i32) {
    %c0_i32 = arith.constant 0 : i32
    %c0_i32_0 = arith.constant 0 : i32
    return %arg0, %c0_i32 : i32, i32
  }
  func.func @transform_2(%arg0: i32) -> (i32, i32) {
    %c0_i32 = arith.constant 0 : i32
    %c0_i32_0 = arith.constant 0 : i32
    return %arg0, %c0_i32 : i32, i32
  }
  func.func @transform_3(%arg0: i32) -> (i32, i32) {
    %c0_i32 = arith.constant 0 : i32
    %c0_i32_0 = arith.constant 0 : i32
    return %arg0, %c0_i32 : i32, i32
  }
  func.func @transform_4(%arg0: i32) -> (i32, i32) {
    %c0_i32 = arith.constant 0 : i32
    %c0_i32_0 = arith.constant 0 : i32
    return %arg0, %c0_i32 : i32, i32
  }
}

</mosaic_0001>

<bundles_post_ra>
// kernel: tpu_custom_call.1
= control target key start
LH: loop header
LB: loop body
LE: loop exit
PB: predicated region body
PF: predicated region fallthrough
CT: control target
= control target key end

     0   :  { %9 = vsyncpa [#allocation3], 0  ;;  %s145_s15 = smov [#allocation2]   ;;  %s204_s0 = inlined_call_operand.vmem [shape: s32[8,3], index: 0, kind: input, shape index: {}]   ;;  %s205_s1 = inlined_call_operand.vmem [shape: f32[8,32], index: 1, kind: input, shape index: {}]   ;;  %s206_s2 = inlined_call_operand.vmem [shape: f32[8,64], index: 2, kind: input, shape index: {}]   ;;  %s207_s3 = inlined_call_operand.hbm [shape: f32[8,16], index: 3, kind: input, shape index: {}]   ;;  %s208_s4 = inlined_call_operand.vmem [shape: s32[8,1], index: 4, kind: output, shape index: {}]  }
   0x1   :  { %s22_s16 = sshll.u32 %s145_s15, 4  ;;  %s121_s19 = scalar_lea.hbm %s207_s3, 128  ;;  %s23_s16 = int_to_ptr.vmem [resolvable:$true] %s22_s16 }
   0x2   :  { %p122_p0 = scmp.ne.s32.totalorder %s207_s3, %s121_s19  ;;  %p125_p1 = scmp.lt.u32.totalorder %s121_s19, %s207_s3 }
   0x4   :  { %p127_p2 = pnand %p125_p1, %p122_p0 }
   0x6   :  { %130 = shalt.err (!%p127_p2)
}
   0x7   :  { %s131_s24 = scalar_lea.vmem %s23_s16, 128  ;;  %p136_p4 = scmp.lt.s32.totalorder %s23_s16, %s23_s16 }
   0x8   :  { %p132_p3 = scmp.ne.s32.totalorder %s23_s16, %s131_s24  ;;  %p137_p5 = scmp.lt.s32.totalorder %s131_s24, %s131_s24 }
   0xa   :  { %p138_p6 = por %p137_p5, %p136_p4 }
   0xc   :  { %p139_p7 = pnand %p138_p6, %p132_p3 }
   0xe   :  { %142 = shalt.err (!%p139_p7)
}
   0xf   :  { %25 = dma.hbm_to_vmem [thread:$0]  %s207_s3, 128, %s23_s16, [#allocation3]  }
  0x10   :  { %143 = dma.done.wait [#allocation3], 128  }
  0x11   :  { %144 = vsyncadd [#allocation3], 4294967168  ;;  %vm57_vm0 = vcmask 523264   ;;  %vm33_vm1 = vcmask 261120   ;;  %v56_v0 = vld [vmem:[%s206_s2] sm:$0xff]  ;;  %v83_v1 = vld [vmem:[#allocation2] sm:$0xff]  ;;  %v31_v6 = vlaneseq }
  0x12   :  { %vm84_vm2 = vcmask 130048   ;;  %v30_v2 = vld [vmem:[%s205_s1] sm:$0xff]  ;;  %v58_v3 = vsel %vm57_vm0, %v56_v0, -inf  ;;  %v146_v49 = vmov 1   ;;  %s147_s3 = smov 127   ;;  %s148_s5 = smov 126  }
  0x13   :  { %v34_v4 = vsel %vm33_vm1, %v30_v2, -inf  ;;  %59 = vmax.xlane.f32.xlu0 %v58_v3  ;;  %v85_v5 = vsel %vm84_vm2, %v83_v1, -inf  ;;  %v32_v7 = vand.u32 127, %v31_v6  ;;  %v29_v41 = vld [vmem:[%s204_s0] sm:$0xff]  ;;  %vm110_vm12 = vcmask 7168  }
  0x14   :  { %35 = vmax.xlane.f32.xlu1 %v34_v4 }
  0x17   :  { %86 = vmax.xlane.f32.xlu0 %v85_v5 }
  0xa0   :  { %v60_v8 = vpop.xlane.xlu0 %59 }
  0xa1   :  { %v36_v9 = vpop.xlane.xlu1 %35  ;;  %vm61_vm3 = vcmp.eq.f32.partialorder %v56_v0, %v60_v8 }
  0xa2   :  { %vm37_vm4 = vcmp.eq.f32.partialorder %v30_v2, %v36_v9  ;;  %v62_v10 = vsel %vm61_vm3, %v32_v7, 64 }
  0xa3   :  { %v38_v11 = vsel %vm37_vm4, %v32_v7, 32  ;;  %v63_v12 = vsel %vm57_vm0, %v62_v10, 2147483647 }
  0xa4   :  { %v39_v13 = vsel %vm33_vm1, %v38_v11, 2147483647  ;;  %v87_v14 = vpop.xlane.xlu0 %86  ;;  %v65_v15 = vshra.s32 %v63_v12, 16  ;;  %v64_v23 = vand.u32 65535, %v63_v12 }
  0xa5   :  { %v41_v16 = vshra.s32 %v39_v13, 16  ;;  %vm88_vm5 = vcmp.eq.f32.partialorder %v83_v1, %v87_v14  ;;  %v40_v27 = vand.u32 65535, %v39_v13 }
  0xa6   :  { %v89_v17 = vsel %vm88_vm5, %v32_v7, 16  ;;  %v67_v18 = vcvt.s32.f32 %v65_v15  ;;  %v66_v25 = vcvt.s32.f32 %v64_v23 }
  0xa7   :  { %v90_v19 = vsel %vm84_vm2, %v89_v17, 2147483647  ;;  %v43_v21 = vcvt.s32.f32 %v41_v16  ;;  %v42_v32 = vcvt.s32.f32 %v40_v27 }
  0xa8   :  { %68 = vmin.xlane.f32.xlu1 %v67_v18  ;;  %v92_v20 = vshra.s32 %v90_v19, 16  ;;  %v91_v26 = vand.u32 65535, %v90_v19 }
  0xaa   :  { %v94_v22 = vcvt.s32.f32 %v92_v20  ;;  %v93_v31 = vcvt.s32.f32 %v91_v26 }
  0xac   :  { %95 = vmin.xlane.f32.xlu0 %v94_v22  ;;  %44 = vmin.xlane.f32.xlu1 %v43_v21 }
 0x135   :  { %v69_v24 = vpop.xlane.xlu1 %68 }
 0x136   :  { %vm70_vm6 = vcmp.eq.f32.partialorder %v67_v18, %v69_v24  ;;  %v75_v35 = vcvt.f32.s32 %v69_v24 }
 0x137   :  { %v71_v28 = vsel %vm70_vm6, %v66_v25, inf }
 0x138   :  { %72 = vmin.xlane.f32.xlu0 %v71_v28  ;;  %v76_v38 = vshll.u32 %v75_v35, 16 }
 0x139   :  { %v96_v29 = vpop.xlane.xlu0 %95  ;;  %v45_v30 = vpop.xlane.xlu1 %44 }
 0x13a   :  { %vm97_vm7 = vcmp.eq.f32.partialorder %v94_v22, %v96_v29  ;;  %vm46_vm8 = vcmp.eq.f32.partialorder %v43_v21, %v45_v30  ;;  %v102_v36 = vcvt.f32.s32 %v96_v29  ;;  %v51_v39 = vcvt.f32.s32 %v45_v30 }
 0x13b   :  { %v98_v33 = vsel %vm97_vm7, %v93_v31, inf  ;;  %v47_v34 = vsel %vm46_vm8, %v42_v32, inf }
 0x13c   :  { %99 = vmin.xlane.f32.xlu1 %v98_v33  ;;  %48 = vmin.xlane.f32.xlu0 %v47_v34  ;;  %v103_v43 = vshll.u32 %v102_v36, 16  ;;  %v52_v46 = vshll.u32 %v51_v39, 16 }
 0x1c5   :  { %v73_v37 = vpop.xlane.xlu0 %72 }
 0x1c6   :  { %v74_v40 = vcvt.f32.s32 %v73_v37 }
 0x1c8   :  { %v77_v42 = vadd.s32 %v76_v38, %v74_v40 }
 0x1c9   :  { %v49_v44 = vpop.xlane.xlu0 %48  ;;  %v100_v45 = vpop.xlane.xlu1 %99 }
 0x1ca   :  { %v50_v47 = vcvt.f32.s32 %v49_v44  ;;  %v101_v48 = vcvt.f32.s32 %v100_v45  ;;  %vm78_vm9 = vcmp.eq.s32.totalorder %v77_v42, %v29_v41 }
 0x1cb   :  { %v79_v50 = vsel %vm78_vm9, 0, %v146_v49 }
 0x1cc   :  { %v53_v51 = vadd.s32 %v52_v46, %v50_v47  ;;  %v104_v52 = vadd.s32 %v103_v43, %v101_v48  ;;  %80 = vrot.lane.b32.xlu1 %v79_v50, %s147_s3 }
 0x1ce   :  { %vm105_vm10 = vcmp.eq.s32.totalorder %v104_v52, %v29_v41  ;;  %vm54_vm11 = vcmp.eq.s32.totalorder %v53_v51, %v29_v41 }
 0x1cf   :  { %v106_v53 = vsel %vm105_vm10, 0, %v146_v49  ;;  %v55_v54 = vsel %vm54_vm11, 0, %v146_v49 }
 0x1d0   :  { %107 = vrot.lane.b32.xlu0 %v106_v53, %s148_s5 }
 0x23e   :  { %v81_v55 = vpop.permute.xlu1 %80 }
 0x23f   :  { %v82_v56 = vadd.s32 %v81_v55, %v55_v54 }
 0x242   :  { %v108_v57 = vpop.permute.xlu0 %107 }
 0x243   :  { %v109_v58 = vadd.s32 %v108_v57, %v82_v56 }
 0x245   :  { %111 = vst.msk [vmem:[%s208_s4] sm:$0xff] %vm110_vm12, %v109_v58 }
 0x246   :  { %116 = vsyncpa [#allocation3], 1 }

</bundles_post_ra>
